<compile_context>
chip_gen: v5e
topology: v5e:2x2
jax: 0.10.0
libtpu: 0.0.40
codegen_flags: <defaults>
</compile_context>

<pallas_src>
import functools

import jax
import jax.numpy as jnp
from jax.experimental import pallas as pl
from jax.experimental.pallas import tpu as pltpu

EMBEDDING_SIZE = 64


def _round_up(n, m):
    return ((n + m - 1) // m) * m


def _policy_net_kernel(x_ref, w1_ref, b1_ref, w2_ref, b2_ref, out_ref, *,
                       apply_softmax):
    # One B-tile per grid step; weights/biases are the full (resident) arrays.
    x = x_ref[...]                 # [tile_b, in]   (compute dtype: f32 or bf16)
    w1 = w1_ref[...]               # [in, emb]      (compute dtype)
    b1 = b1_ref[...]               # [1, emb]       (f32)
    w2 = w2_ref[...]               # [emb, out]     (compute dtype)
    b2 = b2_ref[...]               # [1, out]       (f32)

    # MXU matmul with f32 accumulation; bias add + ReLU epilogue in f32.
    h = jnp.dot(x, w1, preferred_element_type=jnp.float32) + b1   # [tile_b, emb] f32
    h = jnp.maximum(h, 0.0)                                        # ReLU (f32)

    # Second matmul: feed MXU in the compute dtype, accumulate in f32.
    y = jnp.dot(h.astype(w2.dtype), w2,
                preferred_element_type=jnp.float32) + b2           # [tile_b, out] f32

    if apply_softmax:
        # Optional fused policy head: softmax over actions (EUP exp + vrcp).
        y = y - jnp.max(y, axis=-1, keepdims=True)
        e = jnp.exp(y)
        y = e * pl.reciprocal(jnp.sum(e, axis=-1, keepdims=True), approx=True)

    out_ref[...] = y.astype(out_ref.dtype)


def policy_net_forward(x, w1, b1, w2, b2, *, tile_b=None, max_tile_b=1024,
                       compute_dtype=None, apply_softmax=False):
    """x: [B, input_size]. Returns logits [B, output_size] in x.dtype.

    compute_dtype: dtype fed to the MXU (e.g. jnp.bfloat16 to halve HBM
    traffic on x and use the native bf16 MXU path); accumulation and the
    bias/ReLU epilogue are always f32.
    """
    B, in_size = x.shape
    emb = w1.shape[1]
    out_size = w2.shape[1]
    out_dtype = x.dtype
    compute_dtype = jnp.dtype(compute_dtype or x.dtype)

    # Pick a large batch tile (pipelining + 2-TC split), multiple of 8 sublanes.
    if tile_b is None:
        tile_b = min(max_tile_b, _round_up(B, 8))
    tile_b = max(8, _round_up(int(tile_b), 8))
    b_pad = _round_up(B, tile_b)
    num_tiles = b_pad // tile_b

    # Cast matmul operands to the compute dtype; pad the batch to the tile.
    x_c = x.astype(compute_dtype)
    if b_pad != B:
        x_c = jnp.pad(x_c, ((0, b_pad - B), (0, 0)))
    w1_c = w1.astype(compute_dtype)
    w2_c = w2.astype(compute_dtype)
    # Biases as f32 [1, N] rows: broadcast once per tile on the VPU.
    b1_2d = b1.reshape(1, emb).astype(jnp.float32)
    b2_2d = b2.reshape(1, out_size).astype(jnp.float32)

    itemsize = compute_dtype.itemsize
    flops = 2 * b_pad * (in_size * emb + emb * out_size)
    bytes_accessed = (b_pad * in_size * itemsize               # x
                      + in_size * emb * itemsize               # w1
                      + emb * out_size * itemsize              # w2
                      + (emb + out_size) * 4                   # biases
                      + b_pad * out_size * jnp.dtype(out_dtype).itemsize)
    transcendentals = b_pad * out_size if apply_softmax else 0

    kernel = functools.partial(_policy_net_kernel, apply_softmax=apply_softmax)

    out = pl.pallas_call(
        kernel,
        out_shape=jax.ShapeDtypeStruct((b_pad, out_size), out_dtype),
        grid=(num_tiles,),
        in_specs=[
            pl.BlockSpec((tile_b, in_size), lambda i: (i, 0)),   # x: B-tiled
            pl.BlockSpec((in_size, emb), lambda i: (0, 0)),      # w1: resident
            pl.BlockSpec((1, emb), lambda i: (0, 0)),            # b1: resident
            pl.BlockSpec((emb, out_size), lambda i: (0, 0)),     # w2: resident
            pl.BlockSpec((1, out_size), lambda i: (0, 0)),       # b2: resident
        ],
        out_specs=pl.BlockSpec((tile_b, out_size), lambda i: (i, 0)),
        compiler_params=pltpu.CompilerParams(
            dimension_semantics=("parallel",)),
        cost_estimate=pl.CostEstimate(
            flops=flops,
            transcendentals=transcendentals,
            bytes_accessed=bytes_accessed),
    )(x_c, w1_c, b1_2d, w2_c, b2_2d)

    return out[:B] if b_pad != B else out


def init_policy_net_params(key, input_size, output_size):
    """Deterministic init mirroring nn.Linear's Kaiming-uniform-ish ranges."""
    k1, k2, k3, k4 = jax.random.split(key, 4)
    bound1 = 1.0 / jnp.sqrt(input_size)
    bound2 = 1.0 / jnp.sqrt(EMBEDDING_SIZE)
    w1 = jax.random.uniform(k1, (input_size, EMBEDDING_SIZE), jnp.float32,
                            -bound1, bound1)
    b1 = jax.random.uniform(k2, (EMBEDDING_SIZE,), jnp.float32, -bound1, bound1)
    w2 = jax.random.uniform(k3, (EMBEDDING_SIZE, output_size), jnp.float32,
                            -bound2, bound2)
    b2 = jax.random.uniform(k4, (output_size,), jnp.float32, -bound2, bound2)
    return w1, b1, w2, b2


if __name__ == "__main__":
    key = jax.random.PRNGKey(0)
    k_in, k_in2, k_param = jax.random.split(key, 3)

    input_size = 16    # observation dim
    output_size = 8    # action dim
    w1, b1, w2, b2 = init_policy_net_params(k_param, input_size, output_size)

    # --- Case 1: small f32 batch (exact semantics of the PyTorch module) ---
    batch = 8
    x = jax.random.normal(k_in, (batch, input_size), jnp.float32)
    out = jax.block_until_ready(policy_net_forward(x, w1, b1, w2, b2))
    ref = jnp.maximum(x @ w1 + b1, 0.0) @ w2 + b2
    assert out.shape == (batch, output_size)
    assert jnp.allclose(out, ref, atol=1e-5, rtol=1e-5)

    # --- Case 2: ragged batch exercising the B grid axis (multiple parallel
    # tiles + padding) and the bf16 MXU path with f32 accumulation. ---
    batch2 = 200
    x2 = jax.random.normal(k_in2, (batch2, input_size), jnp.float32)
    out2 = jax.block_until_ready(
        policy_net_forward(x2, w1, b1, w2, b2, tile_b=64,
                           compute_dtype=jnp.bfloat16))
    x2b = x2.astype(jnp.bfloat16).astype(jnp.float32)
    w1b = w1.astype(jnp.bfloat16).astype(jnp.float32)
    w2b = w2.astype(jnp.bfloat16).astype(jnp.float32)
    h_ref = jnp.maximum(x2b @ w1b + b1, 0.0)
    ref2 = h_ref.astype(jnp.bfloat16).astype(jnp.float32) @ w2b + b2
    assert out2.shape == (batch2, output_size)
    assert jnp.allclose(out2, ref2, atol=2e-2, rtol=2e-2)

    print("KERNEL_OK")
</pallas_src>

<mosaic_0001>
module attributes {stable_mosaic.version = 11 : i64} {
  func.func @_policy_net_kernel(%arg0: i32, %arg1: memref<8x16xf32, #tpu.memory_space<vmem>>, %arg2: memref<16x64xf32, #tpu.memory_space<vmem>>, %arg3: memref<1x64xf32, #tpu.memory_space<vmem>>, %arg4: memref<64x8xf32, #tpu.memory_space<vmem>>, %arg5: memref<1x8xf32, #tpu.memory_space<vmem>>, %arg6: memref<8x8xf32, #tpu.memory_space<vmem>>) attributes {dimension_semantics = [#tpu.dimension_semantics<parallel>], iteration_bounds = array<i64: 1>, scalar_prefetch = 0 : i64, scratch_operands = 0 : i64, tpu.core_type = #tpu.core_type<tc>, window_params = [{transform_indices = @transform_0, window_bounds = array<i64: 8, 16>}, {pipeline_mode = #tpu.pipeline_mode<synchronous>, transform_indices = @transform_1, window_bounds = array<i64: 16, 64>}, {pipeline_mode = #tpu.pipeline_mode<synchronous>, transform_indices = @transform_2, window_bounds = array<i64: 1, 64>}, {pipeline_mode = #tpu.pipeline_mode<synchronous>, transform_indices = @transform_3, window_bounds = array<i64: 64, 8>}, {pipeline_mode = #tpu.pipeline_mode<synchronous>, transform_indices = @transform_4, window_bounds = array<i64: 1, 8>}, {transform_indices = @transform_5, window_bounds = array<i64: 8, 8>}]} {
    %c0 = arith.constant 0 : index
    %c0_0 = arith.constant 0 : index
    %0 = vector.load %arg1[%c0, %c0_0] : memref<8x16xf32, #tpu.memory_space<vmem>>, vector<8x16xf32>
    %c0_1 = arith.constant 0 : index
    %c0_2 = arith.constant 0 : index
    %1 = vector.load %arg2[%c0_1, %c0_2] : memref<16x64xf32, #tpu.memory_space<vmem>>, vector<16x64xf32>
    %c0_3 = arith.constant 0 : index
    %c0_4 = arith.constant 0 : index
    %2 = vector.load %arg3[%c0_3, %c0_4] : memref<1x64xf32, #tpu.memory_space<vmem>>, vector<1x64xf32>
    %c0_5 = arith.constant 0 : index
    %c0_6 = arith.constant 0 : index
    %3 = vector.load %arg4[%c0_5, %c0_6] : memref<64x8xf32, #tpu.memory_space<vmem>>, vector<64x8xf32>
    %c0_7 = arith.constant 0 : index
    %c0_8 = arith.constant 0 : index
    %4 = vector.load %arg5[%c0_7, %c0_8] : memref<1x8xf32, #tpu.memory_space<vmem>>, vector<1x8xf32>
    %cst = arith.constant dense<0.000000e+00> : vector<8x64xf32>
    %5 = tpu.matmul %0, %1, %cst {dimension_numbers = #tpu.dot_dimension_numbers<[1], [0], [0], [1], [0, 0, 1, 1], [], []>} : vector<8x16xf32>, vector<16x64xf32>, vector<8x64xf32> -> vector<8x64xf32>
    %6 = vector.broadcast %2 : vector<1x64xf32> to vector<8x64xf32>
    %7 = arith.addf %5, %6 : vector<8x64xf32>
    %cst_9 = arith.constant 0.000000e+00 : f32
    %8 = vector.broadcast %cst_9 : f32 to vector<8x64xf32>
    %9 = arith.maximumf %7, %8 : vector<8x64xf32>
    %cst_10 = arith.constant dense<0.000000e+00> : vector<8x8xf32>
    %10 = tpu.matmul %9, %3, %cst_10 {dimension_numbers = #tpu.dot_dimension_numbers<[1], [0], [0], [1], [0, 0, 1, 1], [], []>} : vector<8x64xf32>, vector<64x8xf32>, vector<8x8xf32> -> vector<8x8xf32>
    %11 = vector.broadcast %4 : vector<1x8xf32> to vector<8x8xf32>
    %12 = arith.addf %10, %11 : vector<8x8xf32>
    %c0_11 = arith.constant 0 : index
    %c0_12 = arith.constant 0 : index
    %13 = vector.load %arg6[%c0_11, %c0_12] : memref<8x8xf32, #tpu.memory_space<vmem>>, vector<8x8xf32>
    tpu.vector_store %arg6[%c0_11, %c0_12], %12 {strides = array<i32>} : memref<8x8xf32, #tpu.memory_space<vmem>>, vector<8x8xf32>,
    return
  }
  func.func @transform_0(%arg0: i32) -> (i32, i32) {
    %c0_i32 = arith.constant 0 : i32
    %c0_i32_0 = arith.constant 0 : i32
    return %arg0, %c0_i32 : i32, i32
  }
  func.func @transform_1(%arg0: i32) -> (i32, i32) {
    %c0_i32 = arith.constant 0 : i32
    %c0_i32_0 = arith.constant 0 : i32
    %c0_i32_1 = arith.constant 0 : i32
    return %c0_i32, %c0_i32_0 : i32, i32
  }
  func.func @transform_2(%arg0: i32) -> (i32, i32) {
    %c0_i32 = arith.constant 0 : i32
    %c0_i32_0 = arith.constant 0 : i32
    %c0_i32_1 = arith.constant 0 : i32
    return %c0_i32, %c0_i32_0 : i32, i32
  }
  func.func @transform_3(%arg0: i32) -> (i32, i32) {
    %c0_i32 = arith.constant 0 : i32
    %c0_i32_0 = arith.constant 0 : i32
    %c0_i32_1 = arith.constant 0 : i32
    return %c0_i32, %c0_i32_0 : i32, i32
  }
  func.func @transform_4(%arg0: i32) -> (i32, i32) {
    %c0_i32 = arith.constant 0 : i32
    %c0_i32_0 = arith.constant 0 : i32
    %c0_i32_1 = arith.constant 0 : i32
    return %c0_i32, %c0_i32_0 : i32, i32
  }
  func.func @transform_5(%arg0: i32) -> (i32, i32) {
    %c0_i32 = arith.constant 0 : i32
    %c0_i32_0 = arith.constant 0 : i32
    return %arg0, %c0_i32 : i32, i32
  }
}

</mosaic_0001>

<bundles_post_ra>
// kernel: tpu_custom_call.1
= control target key start
LH: loop header
LB: loop body
LE: loop exit
PB: predicated region body
PF: predicated region fallthrough
CT: control target
= control target key end

     0   :  { %vm37_vm0 = vcmask 130048   ;;  %s211_s0 = inlined_call_operand.vmem [shape: f32[8,16], index: 0, kind: input, shape index: {}]   ;;  %s212_s1 = inlined_call_operand.vmem [shape: f32[16,64], index: 1, kind: input, shape index: {}]   ;;  %s213_s2 = inlined_call_operand.vmem [shape: f32[1,64], index: 2, kind: input, shape index: {}]   ;;  %s214_s3 = inlined_call_operand.vmem [shape: f32[64,8], index: 3, kind: input, shape index: {}]   ;;  %s215_s4 = inlined_call_operand.vmem [shape: f32[1,8], index: 4, kind: input, shape index: {}]   ;;  %s216_s5 = inlined_call_operand.hbm [shape: f32[8,8], index: 5, kind: output, shape index: {}]  }
   0x1   :  { %v23_v0 = vld [vmem:[%s212_s1 + $0x8] sm:$0xff]  ;;  %v22_v1 = vld [vmem:[%s212_s1] sm:$0xff]  ;;  %v32_v3 = vld [vmem:[%s214_s3 + $0x38] sm:$0xff] }
   0x2   :  { %55 = vmatpush.msra.mxu0 %v23_v0  ;;  %v21_v2 = vld [vmem:[%s211_s0] sm:$0xff]  ;;  %v31_v4 = vld [vmem:[%s214_s3 + $0x30] sm:$0xff]  ;;  %77 = vmatpush.msra.mxu1 %v32_v3  ;;  %v30_v5 = vld [vmem:[%s214_s3 + $0x28] sm:$0xff] }
   0x4   :  { %56 = vmatpush.msra.mxu0 %v22_v1 }
   0x5   :  { %10 = vsyncpa [#allocation3], 0  ;;  %107 = vmatmul.msk.f32.vlgmr.msra.gmra.mxu0 %vm37_vm0, %v21_v2  ;;  %78 = vmatpush.msra.mxu1 %v31_v4  ;;  %v29_v6 = vld [vmem:[%s214_s3 + $0x20] sm:$0xff]  ;;  %v28_v7 = vld [vmem:[%s214_s3 + $0x18] sm:$0xff]  ;;  %vm65_vm1 = vcmask 523264   ;;  %s138_s17 = smov [#allocation2]  }
   0x6   :  { %v27_v8 = vld [vmem:[%s214_s3 + $0x10] sm:$0xff]  ;;  %v26_v9 = vld [vmem:[%s214_s3 + $0x8] sm:$0xff]  ;;  %v25_v10 = vld [vmem:[%s214_s3] sm:$0xff]  ;;  %s96_s18 = sshll.u32 %s138_s17, 4  ;;  %s98_s3 = sshll.u32 %s216_s5, 4  ;;  %vm89_vm2 = vcmask 64512   ;;  %s97_s18 = int_to_ptr.vmem [resolvable:$true] %s96_s18  ;;  %s99_s3 = int_to_ptr.hbm [resolvable:$true] %s98_s3 }
   0x7   :  { %79 = vmatpush.msra.mxu1 %v30_v5  ;;  %v110_v11 = vld [vmem:[%s213_s2] ss:$0 sm:$0xff] }
   0x8   :  { %v111_v15 = vld [vmem:[%s215_s4] ss:$0 sm:$0xff] }
   0x9   :  { %80 = vmatpush.msra.mxu1 %v29_v6 }
   0xb   :  { %81 = vmatpush.msra.mxu1 %v28_v7 }
   0xd   :  { %82 = vmatpush.msra.mxu1 %v27_v8 }
   0xf   :  { %83 = vmatpush.msra.mxu1 %v26_v9 }
  0x11   :  { %84 = vmatpush.msra.mxu1 %v25_v10 }
  0x82   :  { %v58_v12 = vpop.f32.mrf.mxu0 }
  0x83   :  { %v59_v13 = vadd.f32 %v110_v11, %v58_v12 }
  0x85   :  { %v61_v14 = vmax.f32 %v59_v13, 0.0 }
  0x87   :  { %108 = vmatmul.msk.f32.vlgmr.msra.gmra.mxu1 %vm65_vm1, %v61_v14 }
 0x104   :  { %v86_v16 = vpop.f32.mrf.mxu1 }
 0x105   :  { %v87_v17 = vadd.f32 %v111_v15, %v86_v16 }
 0x107   :  { %90 = vst.msk [vmem:[#allocation2] sm:$0xff] %vm89_vm2, %v87_v17 }
 0x108   :  { %101 = dma.vmem_to_hbm [thread:$0]  %s97_s18, 128, %s99_s3, [#allocation3]  }
 0x109   :  { %136 = dma.done.wait [#allocation3], 128  }
 0x10a   :  { %137 = vsyncadd [#allocation3], 4294967168 }
 0x10b   :  { %106 = vsyncpa [#allocation3], 1 }

</bundles_post_ra>
